<compile_context>
chip_gen: v5e
topology: v5e:2x2
jax: 0.10.0
libtpu: 0.0.40
codegen_flags: <defaults>
</compile_context>

<pallas_src>
import math
import jax
import jax.numpy as jnp
from jax.experimental import pallas as pl
from jax.experimental.pallas import tpu as pltpu


def _round_up(x, m):
    return (x + m - 1) // m * m


def mlp_kernel(x_ref, w1_ref, b1_ref, w2_ref, b2_ref, w3_ref, b3_ref, o_ref):
    # x_ref: (d_in_pad, TB) bf16  -- batch along lanes (lane-dense)
    # w1_ref: (H_pad, d_in_pad) bf16, w2_ref: (H_pad, H_pad) bf16
    # b1/b2/w3: (H_pad, 1) f32 columns; b3: (1,1) f32 scalar in SMEM
    # o_ref: (1, TB) f32 (lane-dense)

    # fc1: h1^T = W1 @ x^T  (bf16 MXU inputs, f32 accumulation), bias+ReLU f32.
    h1 = jnp.dot(w1_ref[...], x_ref[...], preferred_element_type=jnp.float32)
    h1 = jnp.maximum(h1 + b1_ref[...], 0.0)

    # fc2: h2^T = W2 @ h1^T (cast activation back to bf16 for the MXU).
    h2 = jnp.dot(w2_ref[...], h1.astype(jnp.bfloat16),
                 preferred_element_type=jnp.float32)
    h2 = jnp.maximum(h2 + b2_ref[...], 0.0)

    # fc3 (output width 1): VPU multiply + XLU sublane reduction -> (1, TB),
    # which is exactly the lane-dense output block.  Padded hidden rows are
    # exactly zero so they do not contribute.
    h3 = jnp.sum(h2 * w3_ref[...], axis=0, keepdims=True) + b3_ref[0, 0]

    o_ref[...] = h3.astype(o_ref.dtype)


def mlp_forward(x, params, *, tile_b=512):
    """x: (B, d_in) float32.
    params: PyTorch-layout weights w1 (H, d_in), w2 (H, H), w3 (1, H) and
    biases b1 (H,), b2 (H,), b3 (1,), all float32."""
    x = jnp.asarray(x, jnp.float32)
    B, d_in = x.shape
    w1, b1 = params["w1"], params["b1"]
    w2, b2 = params["w2"], params["b2"]
    w3, b3 = params["w3"], params["b3"]
    H = w1.shape[0]

    # --- pad hidden width to a full lane width (128) and d_in to the bf16
    #     sublane granule (16); zero padding is mathematically exact.
    H_pad = _round_up(H, 128)
    d_pad = _round_up(d_in, 16)

    w1_p = jnp.pad(w1, ((0, H_pad - H), (0, d_pad - d_in))).astype(jnp.bfloat16)
    w2_p = jnp.pad(w2, ((0, H_pad - H), (0, H_pad - H))).astype(jnp.bfloat16)
    b1_c = jnp.pad(b1.reshape(-1), (0, H_pad - H)).reshape(H_pad, 1)
    b2_c = jnp.pad(b2.reshape(-1), (0, H_pad - H)).reshape(H_pad, 1)
    w3_c = jnp.pad(w3.reshape(-1), (0, H_pad - H)).reshape(H_pad, 1)   # f32 VPU operand
    b3_s = b3.reshape(1, 1).astype(jnp.float32)                       # SMEM scalar

    # --- batch tile: multiple of 128 lanes; default 512 (multiple of 256 for
    #     the v6e/v7x MXU M dimension) to amortise per-grid-step overhead.
    if B >= tile_b:
        TB = tile_b
    else:
        TB = _round_up(B, 128)
    B_pad = _round_up(B, TB)

    # Transposed, lane-dense input (d_pad, B_pad); bf16 for the MXU.
    # TODO(synk): if the producer can emit x already as (d_in, B), fuse this
    # transpose upstream instead of paying the padded-layout read once here.
    x_t = jnp.pad(x.T, ((0, d_pad - d_in), (0, B_pad - B))).astype(jnp.bfloat16)

    grid = (B_pad // TB,)
    resident = lambda shape: pl.BlockSpec(shape, lambda i: (0, 0))

    out = pl.pallas_call(
        mlp_kernel,
        out_shape=jax.ShapeDtypeStruct((1, B_pad), jnp.float32),
        grid=grid,
        in_specs=[
            pl.BlockSpec((d_pad, TB), lambda i: (0, i)),        # x^T: streamed, lane-dense
            resident((H_pad, d_pad)),                           # w1 (bf16)
            resident((H_pad, 1)),                               # b1 (f32)
            resident((H_pad, H_pad)),                           # w2 (bf16)
            resident((H_pad, 1)),                               # b2 (f32)
            resident((H_pad, 1)),                               # w3 column (f32)
            pl.BlockSpec(memory_space=pltpu.MemorySpace.SMEM),  # b3 scalar
        ],
        out_specs=pl.BlockSpec((1, TB), lambda i: (0, i)),      # lane-dense output
        compiler_params=pltpu.CompilerParams(
            dimension_semantics=("parallel",),
        ),
    )(x_t, w1_p, b1_c, w2_p, b2_c, w3_c, b3_s)

    # (1, B_pad) lane-dense slab -> (B, 1) to match nn.Module output.
    return out.reshape(-1)[:B].reshape(B, 1)


def init_mlp_params(key, input_layers, hidden_layers):
    """Mirror nn.Linear default init (U[-1/sqrt(fan_in), 1/sqrt(fan_in)]).
    Weights stored in PyTorch layout (out_features, in_features)."""
    ks = jax.random.split(key, 6)

    def linear(kw, kb, fan_in, fan_out):
        bound = 1.0 / math.sqrt(fan_in)
        w = jax.random.uniform(kw, (fan_out, fan_in), jnp.float32, -bound, bound)
        b = jax.random.uniform(kb, (fan_out,), jnp.float32, -bound, bound)
        return w, b

    w1, b1 = linear(ks[0], ks[1], input_layers, hidden_layers)
    w2, b2 = linear(ks[2], ks[3], hidden_layers, hidden_layers)
    w3, b3 = linear(ks[4], ks[5], hidden_layers, 1)
    return {"w1": w1, "b1": b1, "w2": w2, "b2": b2, "w3": w3, "b3": b3}


def mlp_reference_bf16(x, p):
    """Pure-JAX reference using the same bf16-input / f32-accumulate numerics."""
    xb = x.astype(jnp.bfloat16)
    h1 = jnp.dot(xb, p["w1"].T.astype(jnp.bfloat16),
                 preferred_element_type=jnp.float32) + p["b1"]
    h1 = jnp.maximum(h1, 0.0)
    h2 = jnp.dot(h1.astype(jnp.bfloat16), p["w2"].T.astype(jnp.bfloat16),
                 preferred_element_type=jnp.float32) + p["b2"]
    h2 = jnp.maximum(h2, 0.0)
    return jnp.sum(h2 * p["w3"].reshape(1, -1), axis=-1, keepdims=True) + p["b3"]


def mlp_reference_f32(x, p):
    h1 = jnp.maximum(x @ p["w1"].T + p["b1"], 0.0)
    h2 = jnp.maximum(h1 @ p["w2"].T + p["b2"], 0.0)
    return h2 @ p["w3"].T + p["b3"]


if __name__ == "__main__":
    key = jax.random.PRNGKey(0)
    k_param, k_x1, k_x2 = jax.random.split(key, 3)

    input_layers = 16
    hidden_layers = 32
    params = init_mlp_params(k_param, input_layers, hidden_layers)

    # Small batch (single grid step, batch lane-padded to 128).
    x_small = jax.random.normal(k_x1, (8, input_layers), jnp.float32)
    out_small = jax.block_until_ready(mlp_forward(x_small, params))
    assert out_small.shape == (8, 1), out_small.shape
    ref_small = mlp_reference_bf16(x_small, params)
    assert jnp.allclose(out_small, ref_small, atol=1e-3, rtol=1e-3), \
        "mismatch vs bf16-matched reference (small batch)"
    ref_f32 = mlp_reference_f32(x_small, params)
    assert jnp.allclose(out_small, ref_f32, atol=5e-2, rtol=5e-2), \
        "mismatch vs f32 reference (small batch)"

    # Larger batch exercising the multi-step grid + batch-padding path
    # (TB=512 -> 2 grid steps, last tile partially padded).
    x_big = jax.random.normal(k_x2, (640, input_layers), jnp.float32)
    out_big = jax.block_until_ready(mlp_forward(x_big, params))
    assert out_big.shape == (640, 1), out_big.shape
    ref_big = mlp_reference_bf16(x_big, params)
    assert jnp.allclose(out_big, ref_big, atol=1e-3, rtol=1e-3), \
        "mismatch vs bf16-matched reference (tiled batch)"

    print("KERNEL_OK")
</pallas_src>

<mosaic_0001>
module attributes {stable_mosaic.version = 11 : i64} {
  func.func @mlp_kernel(%arg0: i32, %arg1: memref<16x128xbf16, #tpu.memory_space<vmem>>, %arg2: memref<128x16xbf16, #tpu.memory_space<vmem>>, %arg3: memref<128x1xf32, #tpu.memory_space<vmem>>, %arg4: memref<128x128xbf16, #tpu.memory_space<vmem>>, %arg5: memref<128x1xf32, #tpu.memory_space<vmem>>, %arg6: memref<128x1xf32, #tpu.memory_space<vmem>>, %arg7: memref<1x1xf32, #tpu.memory_space<smem>>, %arg8: memref<1x128xf32, #tpu.memory_space<vmem>>) attributes {dimension_semantics = [#tpu.dimension_semantics<parallel>], iteration_bounds = array<i64: 1>, scalar_prefetch = 0 : i64, scratch_operands = 0 : i64, tpu.core_type = #tpu.core_type<tc>, window_params = [{transform_indices = @transform_0, window_bounds = array<i64: 16, 128>}, {pipeline_mode = #tpu.pipeline_mode<synchronous>, transform_indices = @transform_1, window_bounds = array<i64: 128, 16>}, {pipeline_mode = #tpu.pipeline_mode<synchronous>, transform_indices = @transform_2, window_bounds = array<i64: 128, 1>}, {pipeline_mode = #tpu.pipeline_mode<synchronous>, transform_indices = @transform_3, window_bounds = array<i64: 128, 128>}, {pipeline_mode = #tpu.pipeline_mode<synchronous>, transform_indices = @transform_4, window_bounds = array<i64: 128, 1>}, {pipeline_mode = #tpu.pipeline_mode<synchronous>, transform_indices = @transform_5, window_bounds = array<i64: 128, 1>}, {transform_indices = @transform_6, window_bounds = array<i64: 1, 1>}, {transform_indices = @transform_7, window_bounds = array<i64: 1, 128>}]} {
    %c0 = arith.constant 0 : index
    %c0_0 = arith.constant 0 : index
    %0 = vector.load %arg2[%c0, %c0_0] : memref<128x16xbf16, #tpu.memory_space<vmem>>, vector<128x16xbf16>
    %c0_1 = arith.constant 0 : index
    %c0_2 = arith.constant 0 : index
    %1 = vector.load %arg1[%c0_1, %c0_2] : memref<16x128xbf16, #tpu.memory_space<vmem>>, vector<16x128xbf16>
    %cst = arith.constant dense<0.000000e+00> : vector<128x128xf32>
    %2 = tpu.matmul %0, %1, %cst {dimension_numbers = #tpu.dot_dimension_numbers<[1], [0], [0], [1], [0, 0, 1, 1], [], []>} : vector<128x16xbf16>, vector<16x128xbf16>, vector<128x128xf32> -> vector<128x128xf32>
    %c0_3 = arith.constant 0 : index
    %c0_4 = arith.constant 0 : index
    %3 = vector.load %arg3[%c0_3, %c0_4] : memref<128x1xf32, #tpu.memory_space<vmem>>, vector<128x1xf32>
    %4 = vector.broadcast %3 : vector<128x1xf32> to vector<128x128xf32>
    %5 = arith.addf %2, %4 : vector<128x128xf32>
    %cst_5 = arith.constant 0.000000e+00 : f32
    %6 = vector.broadcast %cst_5 : f32 to vector<128x128xf32>
    %7 = arith.maximumf %5, %6 : vector<128x128xf32>
    %c0_6 = arith.constant 0 : index
    %c0_7 = arith.constant 0 : index
    %8 = vector.load %arg4[%c0_6, %c0_7] : memref<128x128xbf16, #tpu.memory_space<vmem>>, vector<128x128xbf16>
    %9 = arith.truncf %7 : vector<128x128xf32> to vector<128x128xbf16>
    %cst_8 = arith.constant dense<0.000000e+00> : vector<128x128xf32>
    %10 = tpu.matmul %8, %9, %cst_8 {dimension_numbers = #tpu.dot_dimension_numbers<[1], [0], [0], [1], [0, 0, 1, 1], [], []>} : vector<128x128xbf16>, vector<128x128xbf16>, vector<128x128xf32> -> vector<128x128xf32>
    %c0_9 = arith.constant 0 : index
    %c0_10 = arith.constant 0 : index
    %11 = vector.load %arg5[%c0_9, %c0_10] : memref<128x1xf32, #tpu.memory_space<vmem>>, vector<128x1xf32>
    %12 = vector.broadcast %11 : vector<128x1xf32> to vector<128x128xf32>
    %13 = arith.addf %10, %12 : vector<128x128xf32>
    %cst_11 = arith.constant 0.000000e+00 : f32
    %14 = vector.broadcast %cst_11 : f32 to vector<128x128xf32>
    %15 = arith.maximumf %13, %14 : vector<128x128xf32>
    %c0_12 = arith.constant 0 : index
    %c0_13 = arith.constant 0 : index
    %16 = vector.load %arg6[%c0_12, %c0_13] : memref<128x1xf32, #tpu.memory_space<vmem>>, vector<128x1xf32>
    %17 = vector.broadcast %16 : vector<128x1xf32> to vector<128x128xf32>
    %18 = arith.mulf %15, %17 : vector<128x128xf32>
    %cst_14 = arith.constant dense<0.000000e+00> : vector<128xf32>
    %19 = vector.multi_reduction <add>, %18, %cst_14 [0] : vector<128x128xf32> to vector<128xf32>
    %20 = vector.shape_cast %19 : vector<128xf32> to vector<1x128xf32>
    %c0_15 = arith.constant 0 : index
    %c0_16 = arith.constant 0 : index
    %21 = memref.load %arg7[%c0_15, %c0_16] : memref<1x1xf32, #tpu.memory_space<smem>>
    %22 = vector.broadcast %21 : f32 to vector<1x128xf32>
    %23 = arith.addf %20, %22 : vector<1x128xf32>
    %c0_17 = arith.constant 0 : index
    %c0_18 = arith.constant 0 : index
    %24 = vector.load %arg8[%c0_17, %c0_18] : memref<1x128xf32, #tpu.memory_space<vmem>>, vector<1x128xf32>
    tpu.vector_store %arg8[%c0_17, %c0_18], %23 {strides = array<i32>} : memref<1x128xf32, #tpu.memory_space<vmem>>, vector<1x128xf32>,
    return
  }
  func.func @transform_0(%arg0: i32) -> (i32, i32) {
    %c0_i32 = arith.constant 0 : i32
    %c0_i32_0 = arith.constant 0 : i32
    return %c0_i32, %arg0 : i32, i32
  }
  func.func @transform_1(%arg0: i32) -> (i32, i32) {
    %c0_i32 = arith.constant 0 : i32
    %c0_i32_0 = arith.constant 0 : i32
    %c0_i32_1 = arith.constant 0 : i32
    return %c0_i32, %c0_i32_0 : i32, i32
  }
  func.func @transform_2(%arg0: i32) -> (i32, i32) {
    %c0_i32 = arith.constant 0 : i32
    %c0_i32_0 = arith.constant 0 : i32
    %c0_i32_1 = arith.constant 0 : i32
    return %c0_i32, %c0_i32_0 : i32, i32
  }
  func.func @transform_3(%arg0: i32) -> (i32, i32) {
    %c0_i32 = arith.constant 0 : i32
    %c0_i32_0 = arith.constant 0 : i32
    %c0_i32_1 = arith.constant 0 : i32
    return %c0_i32, %c0_i32_0 : i32, i32
  }
  func.func @transform_4(%arg0: i32) -> (i32, i32) {
    %c0_i32 = arith.constant 0 : i32
    %c0_i32_0 = arith.constant 0 : i32
    %c0_i32_1 = arith.constant 0 : i32
    return %c0_i32, %c0_i32_0 : i32, i32
  }
  func.func @transform_5(%arg0: i32) -> (i32, i32) {
    %c0_i32 = arith.constant 0 : i32
    %c0_i32_0 = arith.constant 0 : i32
    %c0_i32_1 = arith.constant 0 : i32
    return %c0_i32, %c0_i32_0 : i32, i32
  }
  func.func @transform_6(%arg0: i32) -> (i32, i32) {
    %c0_i32 = arith.constant 0 : i32
    %c0_i32_0 = arith.constant 0 : i32
    %c0_i32_1 = arith.constant 0 : i32
    return %c0_i32, %c0_i32_0 : i32, i32
  }
  func.func @transform_7(%arg0: i32) -> (i32, i32) {
    %c0_i32 = arith.constant 0 : i32
    %c0_i32_0 = arith.constant 0 : i32
    return %c0_i32, %arg0 : i32, i32
  }
}

</mosaic_0001>

<bundles_post_ra>
// kernel: tpu_custom_call.1
= control target key start
LH: loop header
LB: loop body
LE: loop exit
PB: predicated region body
PF: predicated region fallthrough
CT: control target
= control target key end

     0   :  { %v798_v3 = vmov 0   ;;  %vm189_vm0 = vcmask 130048   ;;  %s1065_s0 = inlined_call_operand.vmem [shape: bf16[16,128], index: 0, kind: input, shape index: {}]   ;;  %s1066_s1 = inlined_call_operand.vmem [shape: bf16[128,16], index: 1, kind: input, shape index: {}]   ;;  %s1067_s2 = inlined_call_operand.vmem [shape: f32[128,1], index: 2, kind: input, shape index: {}]   ;;  %s1068_s3 = inlined_call_operand.vmem [shape: bf16[128,128], index: 3, kind: input, shape index: {}]   ;;  %s1069_s4 = inlined_call_operand.vmem [shape: f32[128,1], index: 4, kind: input, shape index: {}]   ;;  %s1070_s5 = inlined_call_operand.vmem [shape: f32[128,1], index: 5, kind: input, shape index: {}]   ;;  %s1071_s6 = inlined_call_operand.<no memory space> [shape: f32[1,1], index: 6, kind: input, shape index: {}]   ;;  %s1072_s7 = inlined_call_operand.hbm [shape: f32[1,128], index: 7, kind: output, shape index: {}]  }
   0x1   :  { %v61_v0 = vld [vmem:[%s1067_s2 + $0x70] sm:$0xff]  ;;  %v59_v1 = vld [vmem:[%s1067_s2 + $0x60] sm:$0xff]  ;;  %771 = vset.pattern.permute.xlu2 %v798_v3  ;;  %770 = vset.pattern.permute.xlu1 %v798_v3  ;;  %v746_v6 = vld [vmem:[%s1066_s1 + $0x28] sm:$0xff] }
   0x2   :  { %v57_v2 = vld [vmem:[%s1067_s2 + $0x50] sm:$0xff]  ;;  %v749_v4 = vld [vmem:[%s1065_s0] sm:$0xff]  ;;  %769 = vset.pattern.permute.xlu0 %v798_v3  ;;  %125 = vperm.xlu1 %770, %v59_v1   ;;  %v60_v7 = vld [vmem:[%s1067_s2 + $0x68] sm:$0xff] }
   0x3   :  { %135 = vperm.xlu0 %769, %v61_v0   ;;  %115 = vperm.xlu2 %771, %v57_v2   ;;  %v741_v5 = vld [vmem:[%s1066_s1] sm:$0xff] }
   0x4   :  { %221 = vmatpush.bf16.msra.mxu0 %v749_v4  ;;  %758 = vmatpush.bf16.msra.mxu3 %v749_v4 }
   0x7   :  { %701 = vmatmul.msk.bf16.vlgmr.msra.gmra.mxu0 %vm189_vm0, %v741_v5  ;;  %706 = vmatmul.msk.bf16.vlgmr.msra.gmra.mxu3 %vm189_vm0, %v746_v6 }
   0x8   :  { %13 = vsyncpa [#allocation4], 0  ;;  %v62_v8 = vld [vmem:[%s1067_s2 + $0x78] sm:$0xff]  ;;  %v56_v10 = vld [vmem:[%s1067_s2 + $0x48] sm:$0xff]  ;;  %s799_s27 = smov [#allocation3]  }
   0x9   :  { %v58_v9 = vld [vmem:[%s1067_s2 + $0x58] sm:$0xff]  ;;  %v55_v11 = vld [vmem:[%s1067_s2 + $0x40] sm:$0xff]  ;;  %v53_v12 = vld [vmem:[%s1067_s2 + $0x30] sm:$0xff]  ;;  %s654_s28 = sshll.u32 %s799_s27, 4  ;;  %s655_s28 = int_to_ptr.vmem [resolvable:$true] %s654_s28 }
   0xa   :  { %130 = vperm.xlu1 %770, %v60_v7   ;;  %v742_v13 = vld [vmem:[%s1066_s1 + $0x8] sm:$0xff]  ;;  %v747_v14 = vld [vmem:[%s1066_s1 + $0x30] sm:$0xff]  ;;  %v51_v15 = vld [vmem:[%s1067_s2 + $0x20] sm:$0xff] }
   0xb   :  { %140 = vperm.xlu0 %769, %v62_v8   ;;  %120 = vperm.xlu2 %771, %v58_v9   ;;  %v54_v16 = vld [vmem:[%s1067_s2 + $0x38] sm:$0xff]  ;;  %v52_v17 = vld [vmem:[%s1067_s2 + $0x28] sm:$0xff]  ;;  %v49_v19 = vld [vmem:[%s1067_s2 + $0x10] sm:$0xff] }
   0xc   :  { %v50_v18 = vld [vmem:[%s1067_s2 + $0x18] sm:$0xff]  ;;  %v47_v20 = vld [vmem:[%s1067_s2] sm:$0xff]  ;;  %v743_v21 = vld [vmem:[%s1066_s1 + $0x10] sm:$0xff] }
   0xd   :  { %v748_v22 = vld [vmem:[%s1066_s1 + $0x38] sm:$0xff]  ;;  %v303_v23 = vld [vmem:[%s1069_s4] sm:$0xff]  ;;  %v48_v24 = vld [vmem:[%s1067_s2 + $0x8] sm:$0xff] }
   0xe   :  { %v304_v25 = vld [vmem:[%s1069_s4 + $0x8] sm:$0xff]  ;;  %v306_v26 = vld [vmem:[%s1069_s4 + $0x18] sm:$0xff]  ;;  %v305_v27 = vld [vmem:[%s1069_s4 + $0x10] sm:$0xff] }
   0xf   :  { %v307_v28 = vld [vmem:[%s1069_s4 + $0x20] sm:$0xff]  ;;  %v744_v29 = vld [vmem:[%s1066_s1 + $0x18] sm:$0xff]  ;;  %v309_v30 = vld [vmem:[%s1069_s4 + $0x30] sm:$0xff] }
  0x10   :  { %v308_v31 = vld [vmem:[%s1069_s4 + $0x28] sm:$0xff]  ;;  %v310_v32 = vld [vmem:[%s1069_s4 + $0x38] sm:$0xff]  ;;  %v311_v34 = vld [vmem:[%s1069_s4 + $0x40] sm:$0xff] }
  0x11   :  { %v312_v33 = vld [vmem:[%s1069_s4 + $0x48] sm:$0xff]  ;;  %v313_v35 = vld [vmem:[%s1069_s4 + $0x50] sm:$0xff]  ;;  %v745_v36 = vld [vmem:[%s1066_s1 + $0x20] sm:$0xff]  ;;  %s656_s1 = sshll.u32 %s1072_s7, 4  ;;  %s657_s1 = int_to_ptr.hbm [resolvable:$true] %s656_s1 }
  0x12   :  { %110 = vperm.xlu1 %770, %v56_v10   ;;  %v315_v37 = vld [vmem:[%s1069_s4 + $0x60] sm:$0xff]  ;;  %v314_v38 = vld [vmem:[%s1069_s4 + $0x58] sm:$0xff]  ;;  %v316_v39 = vld [vmem:[%s1069_s4 + $0x68] sm:$0xff] }
  0x13   :  { %105 = vperm.xlu0 %769, %v55_v11   ;;  %95 = vperm.xlu2 %771, %v53_v12   ;;  %v318_v40 = vld [vmem:[%s1069_s4 + $0x78] sm:$0xff]  ;;  %v317_v41 = vld [vmem:[%s1069_s4 + $0x70] sm:$0xff]  ;;  %v512_v42 = vld [vmem:[%s1070_s5] sm:$0xff] }
  0x14   :  { %v514_v43 = vld [vmem:[%s1070_s5 + $0x10] sm:$0xff]  ;;  %v513_v44 = vld [vmem:[%s1070_s5 + $0x8] sm:$0xff]  ;;  %v515_v45 = vld [vmem:[%s1070_s5 + $0x18] sm:$0xff] }
  0x15   :  { %v517_v46 = vld [vmem:[%s1070_s5 + $0x28] sm:$0xff]  ;;  %v516_v47 = vld [vmem:[%s1070_s5 + $0x20] sm:$0xff]  ;;  %v518_v48 = vld [vmem:[%s1070_s5 + $0x30] sm:$0xff] }
  0x16   :  { %v520_v49 = vld [vmem:[%s1070_s5 + $0x40] sm:$0xff]  ;;  %v519_v50 = vld [vmem:[%s1070_s5 + $0x38] sm:$0xff]  ;;  %v521_v51 = vld [vmem:[%s1070_s5 + $0x48] sm:$0xff] }
  0x17   :  { %702 = vmatmul.msk.bf16.gmra.mxu0 %vm189_vm0, %v742_v13  ;;  %707 = vmatmul.msk.bf16.gmra.mxu3 %vm189_vm0, %v747_v14  ;;  %v523_v52 = vld [vmem:[%s1070_s5 + $0x58] sm:$0xff]  ;;  %v522_v53 = vld [vmem:[%s1070_s5 + $0x50] sm:$0xff]  ;;  %v524_v54 = vld [vmem:[%s1070_s5 + $0x60] sm:$0xff] }
  0x18   :  { %v526_v57 = vld [vmem:[%s1070_s5 + $0x70] sm:$0xff]  ;;  %v525_v58 = vld [vmem:[%s1070_s5 + $0x68] sm:$0xff]  ;;  %v527_v59 = vld [vmem:[%s1070_s5 + $0x78] sm:$0xff] }
  0x1a   :  { %85 = vperm.xlu1 %770, %v51_v15  }
  0x1b   :  { %100 = vperm.xlu0 %769, %v54_v16   ;;  %90 = vperm.xlu2 %771, %v52_v17  }
  0x22   :  { %80 = vperm.xlu1 %770, %v50_v18  }
  0x23   :  { %75 = vperm.xlu0 %769, %v49_v19   ;;  %65 = vperm.xlu2 %771, %v47_v20  }
  0x27   :  { %703 = vmatmul.msk.bf16.gmra.mxu0 %vm189_vm0, %v743_v21  ;;  %708 = vmatmul.msk.bf16.gmra.mxu3 %vm189_vm0, %v748_v22 }
  0x2a   :  { %321 = vperm.xlu1 %770, %v303_v23  }
  0x2b   :  { %70 = vperm.xlu0 %769, %v48_v24   ;;  %326 = vperm.xlu2 %771, %v304_v25  }
  0x32   :  { %336 = vperm.xlu1 %770, %v306_v26  }
  0x33   :  { %331 = vperm.xlu0 %769, %v305_v27   ;;  %341 = vperm.xlu2 %771, %v307_v28  }
  0x37   :  { %704 = vmatmul.msk.bf16.gmra.mxu0 %vm189_vm0, %v744_v29 }
  0x3a   :  { %351 = vperm.xlu1 %770, %v309_v30  }
  0x3b   :  { %346 = vperm.xlu0 %769, %v308_v31   ;;  %356 = vperm.xlu2 %771, %v310_v32  }
  0x42   :  { %366 = vperm.xlu1 %770, %v312_v33  }
  0x43   :  { %361 = vperm.xlu0 %769, %v311_v34   ;;  %371 = vperm.xlu2 %771, %v313_v35  }
  0x47   :  { %705 = vmatmul.msk.bf16.gmra.mxu0 %vm189_vm0, %v745_v36 }
  0x4a   :  { %381 = vperm.xlu1 %770, %v315_v37  }
  0x4b   :  { %376 = vperm.xlu0 %769, %v314_v38   ;;  %386 = vperm.xlu2 %771, %v316_v39  }
  0x52   :  { %396 = vperm.xlu1 %770, %v318_v40  }
  0x53   :  { %391 = vperm.xlu0 %769, %v317_v41   ;;  %530 = vperm.xlu2 %771, %v512_v42  }
  0x5a   :  { %540 = vperm.xlu1 %770, %v514_v43  }
  0x5b   :  { %535 = vperm.xlu0 %769, %v513_v44   ;;  %545 = vperm.xlu2 %771, %v515_v45  }
  0x5d   :  { %v116_v55 = vpop.permute.xlu2 %115 }
  0x62   :  { %555 = vperm.xlu1 %770, %v517_v46  }
  0x63   :  { %550 = vperm.xlu0 %769, %v516_v47   ;;  %560 = vperm.xlu2 %771, %v518_v48  }
  0x65   :  { %v121_v60 = vpop.permute.xlu2 %120 }
  0x6a   :  { %570 = vperm.xlu1 %770, %v520_v49  }
  0x6b   :  { %565 = vperm.xlu0 %769, %v519_v50   ;;  %575 = vperm.xlu2 %771, %v521_v51  }
  0x6d   :  { %v96_v0 = vpop.permute.xlu2 %95 }
  0x72   :  { %585 = vperm.xlu1 %770, %v523_v52  }
  0x73   :  { %580 = vperm.xlu0 %769, %v522_v53   ;;  %590 = vperm.xlu2 %771, %v524_v54  }
  0x74   :  { %v126_v19 = vpop.permute.xlu1 %125 }
  0x75   :  { %v136_v56 = vpop.permute.xlu0 %135  ;;  %v91_v4 = vpop.permute.xlu2 %90 }
  0x7a   :  { %600 = vperm.xlu1 %770, %v526_v57  }
  0x7b   :  { %595 = vperm.xlu0 %769, %v525_v58   ;;  %605 = vperm.xlu2 %771, %v527_v59  }
  0x7c   :  { %v131_v23 = vpop.permute.xlu1 %130 }
  0x7d   :  { %v141_v61 = vpop.permute.xlu0 %140  ;;  %v66_v9 = vpop.permute.xlu2 %65 }
  0x84   :  { %v223_v62 = vpop.f32.mrf.mxu0  ;;  %v111_v41 = vpop.permute.xlu1 %110 }
  0x85   :  { %v106_v63 = vpop.permute.xlu0 %105  ;;  %v224_v10 = vadd.f32 %v223_v62, %v66_v9  ;;  %v757_v9 = vld [vmem:[%s1068_s3 + $0x38] sm:$0xff] }
  0x87   :  { %v263_v14 = vmax.f32 %v224_v10, 0.0 }
  0x8a   :  { %v248_v1 = vpop.f32.mrf.mxu3 }
  0x8b   :  { %v249_v31 = vadd.f32 %v248_v1, %v116_v55 }
  0x8c   :  { %v225_v2 = vpop.f32.mrf.mxu0  ;;  %v86_v43 = vpop.permute.xlu1 %85 }
  0x8d   :  { %v101_v3 = vpop.permute.xlu0 %100  ;;  %v273_v36 = vmax.f32 %v249_v31, 0.0 }
  0x92   :  { %v250_v5 = vpop.f32.mrf.mxu3 }
  0x93   :  { %v251_v32 = vadd.f32 %v250_v5, %v121_v60  ;;  %v755_v5 = vld [vmem:[%s1068_s3 + $0x28] sm:$0xff] }
  0x94   :  { %v228_v6 = vpop.f32.mrf.mxu0 }
  0x95   :  { %v76_v7 = vpop.permute.xlu0 %75  ;;  %v274_v37 = vmax.f32 %v251_v32, 0.0 }
  0x96   :  { %v229_v60 = vadd.f32 %v228_v6, %v76_v7  ;;  %v752_v6 = vld [vmem:[%s1068_s3 + $0x10] sm:$0xff] }
  0x97   :  { %v300_v40 = vpack.c.bf16 %v274_v37, %v273_v36  ;;  %v756_v7 = vld [vmem:[%s1068_s3 + $0x30] sm:$0xff] }
  0x9a   :  { %v253_v8 = vpop.f32.mrf.mxu3 }
  0x9b   :  { %v254_v25 = vadd.f32 %v253_v8, %v126_v19  ;;  %v753_v8 = vld [vmem:[%s1068_s3 + $0x18] sm:$0xff] }
  0x9c   :  { %v230_v11 = vpop.f32.mrf.mxu0 }
  0x9d   :  { %v71_v12 = vpop.permute.xlu0 %70  ;;  %v275_v33 = vmax.f32 %v254_v25, 0.0 }
  0x9e   :  { %v226_v13 = vadd.f32 %v225_v2, %v71_v12  ;;  %v750_v2 = vld [vmem:[%s1068_s3] sm:$0xff] }
  0xa0   :  { %v264_v15 = vmax.f32 %v226_v13, 0.0 }
  0xa2   :  { %v255_v16 = vpop.f32.mrf.mxu3  ;;  %v1019_v17 = vpack.c.bf16 %v264_v15, %v263_v14 }
  0xa3   :  { %v256_v26 = vadd.f32 %v255_v16, %v131_v23 }
  0xa4   :  { %v233_v18 = vpop.f32.mrf.mxu0 }
  0xa5   :  { %v276_v34 = vmax.f32 %v256_v26, 0.0  ;;  %v234_v54 = vadd.f32 %v233_v18, %v86_v43  ;;  %v332_v12 = vpop.permute.xlu0 %331 }
  0xa7   :  { %v301_v38 = vpack.c.bf16 %v276_v34, %v275_v33 }
  0xaa   :  { %v258_v20 = vpop.f32.mrf.mxu3 }
  0xab   :  { %v259_v22 = vadd.f32 %v258_v20, %v136_v56  ;;  %v81_v56 = vpop.permute.xlu1 %80 }
  0xac   :  { %v235_v21 = vpop.f32.mrf.mxu0  ;;  %v231_v57 = vadd.f32 %v230_v11, %v81_v56  ;;  %v327_v11 = vpop.permute.xlu2 %326 }
  0xad   :  { %v277_v27 = vmax.f32 %v259_v22, 0.0  ;;  %v236_v51 = vadd.f32 %v235_v21, %v91_v4  ;;  %v751_v4 = vld [vmem:[%s1068_s3 + $0x8] sm:$0xff]  ;;  %v347_v15 = vpop.permute.xlu0 %346 }
  0xae   :  { %v266_v62 = vmax.f32 %v231_v57, 0.0 }
  0xaf   :  { %v268_v58 = vmax.f32 %v236_v51, 0.0 }
  0xb2   :  { %v260_v24 = vpop.f32.mrf.mxu3 }
  0xb3   :  { %v261_v28 = vadd.f32 %v260_v24, %v141_v61  ;;  %v267_v61 = vmax.f32 %v234_v54, 0.0  ;;  %v322_v10 = vpop.permute.xlu1 %321 }
  0xb4   :  { %v238_v29 = vpop.f32.mrf.mxu0  ;;  %v342_v14 = vpop.permute.xlu2 %341 }
  0xb5   :  { %v278_v30 = vmax.f32 %v261_v28, 0.0  ;;  %v239_v48 = vadd.f32 %v238_v29, %v96_v0  ;;  %v265_v0 = vmax.f32 %v229_v60, 0.0  ;;  %v362_v19 = vpop.permute.xlu0 %361 }
  0xb7   :  { %v302_v35 = vpack.c.bf16 %v278_v30, %v277_v27  ;;  %v269_v55 = vmax.f32 %v239_v48, 0.0  ;;  %v296_v1 = vpack.c.bf16 %v266_v62, %v265_v0 }
  0xb9   :  { %447 = vmatpush.bf16.msra.mxu1 %v302_v35  ;;  %759 = vmatpush.bf16.msra.mxu2 %v302_v35 }
  0xbb   :  { %v337_v13 = vpop.permute.xlu1 %336 }
  0xbc   :  { %v240_v39 = vpop.f32.mrf.mxu0 }
  0xbd   :  { %448 = vmatpush.bf16.msra.mxu1 %v301_v38  ;;  %760 = vmatpush.bf16.msra.mxu2 %v301_v38  ;;  %v241_v46 = vadd.f32 %v240_v39, %v101_v3  ;;  %v754_v3 = vld [vmem:[%s1068_s3 + $0x20] sm:$0xff]  ;;  %v377_v24 = vpop.permute.xlu0 %376 }
  0xbf   :  { %v270_v52 = vmax.f32 %v241_v46, 0.0 }
  0xc1   :  { %449 = vmatpush.bf16.msra.mxu1 %v300_v40  ;;  %761 = vmatpush.bf16.msra.mxu2 %v300_v40  ;;  %v298_v59 = vpack.c.bf16 %v270_v52, %v269_v55 }
  0xc3   :  { %v352_v16 = vpop.permute.xlu1 %351 }
  0xc4   :  { %v243_v42 = vpop.f32.mrf.mxu0 }
  0xc5   :  { %v244_v44 = vadd.f32 %v243_v42, %v106_v63  ;;  %v297_v63 = vpack.c.bf16 %v268_v58, %v267_v61  ;;  %v1051_v29 = vpop.permute.xlu0 %391 }
  0xc7   :  { %v271_v49 = vmax.f32 %v244_v44, 0.0 }
  0xcb   :  { %v367_v20 = vpop.permute.xlu1 %366 }
  0xcc   :  { %v245_v45 = vpop.f32.mrf.mxu0 }
  0xcd   :  { %v246_v47 = vadd.f32 %v245_v45, %v111_v41  ;;  %v536_v35 = vpop.permute.xlu0 %535 }
  0xcf   :  { %v272_v50 = vmax.f32 %v246_v47, 0.0 }
  0xd1   :  { %v299_v53 = vpack.c.bf16 %v272_v50, %v271_v49 }
  0xd3   :  { %450 = vmatpush.bf16.msra.mxu1 %v299_v53  ;;  %762 = vmatpush.bf16.msra.mxu2 %v299_v53  ;;  %v1047_v25 = vpop.permute.xlu1 %381 }
  0xd5   :  { %v551_v44 = vpop.permute.xlu0 %550 }
  0xd7   :  { %451 = vmatpush.bf16.msra.mxu1 %v298_v59  ;;  %763 = vmatpush.bf16.msra.mxu2 %v298_v59 }
  0xdb   :  { %452 = vmatpush.bf16.msra.mxu1 %v297_v63  ;;  %764 = vmatpush.bf16.msra.mxu2 %v297_v63  ;;  %v1053_v31 = vpop.permute.xlu1 %396 }
  0xdd   :  { %v566_v0 = vpop.permute.xlu0 %565 }
  0xdf   :  { %453 = vmatpush.bf16.msra.mxu1 %v296_v1  ;;  %765 = vmatpush.bf16.msra.mxu2 %v296_v1 }
  0xe3   :  { %454 = vmatpush.bf16.msra.mxu1 %v1019_v17  ;;  %766 = vmatpush.bf16.msra.mxu2 %v1019_v17  ;;  %v357_v17 = vpop.permute.xlu2 %356  ;;  %v541_v37 = vpop.permute.xlu1 %540 }
  0xe6   :  { %455 = vmatmul.bf16.vlgmr.msra.gmra.mxu1 %v750_v2  ;;  %475 = vmatmul.bf16.vlgmr.msra.gmra.mxu2 %v754_v3 }
  0xeb   :  { %v372_v21 = vpop.permute.xlu2 %371  ;;  %v556_v47 = vpop.permute.xlu1 %555 }
  0xf3   :  { %v1049_v27 = vpop.permute.xlu2 %386 }
  0xf6   :  { %460 = vmatmul.bf16.gmra.mxu1 %v751_v4  ;;  %480 = vmatmul.bf16.gmra.mxu2 %v755_v5  ;;  %v571_v4 = vpop.permute.xlu1 %570 }
  0xfb   :  { %v531_v33 = vpop.permute.xlu2 %530 }
 0x103   :  { %v546_v38 = vpop.permute.xlu2 %545 }
 0x106   :  { %465 = vmatmul.bf16.gmra.mxu1 %v752_v6  ;;  %485 = vmatmul.bf16.gmra.mxu2 %v756_v7 }
 0x10b   :  { %v561_v48 = vpop.permute.xlu2 %560 }
 0x113   :  { %v576_v5 = vpop.permute.xlu2 %575 }
 0x116   :  { %470 = vmatmul.bf16.gmra.mxu1 %v753_v8  ;;  %490 = vmatmul.bf16.gmra.mxu2 %v757_v9 }
 0x163   :  { %v456_v18 = vpop.f32.mrf.mxu1 }
 0x164   :  { %v457_v42 = vadd.f32 %v456_v18, %v322_v10 }
 0x166   :  { %v496_v49 = vmax.f32 %v457_v42, 0.0  ;;  %v591_v42 = vpop.permute.xlu2 %590 }
 0x168   :  { %v608_v57 = vmul.f32 %v531_v33, %v496_v49 }
 0x169   :  { %v476_v22 = vpop.f32.mrf.mxu2 }
 0x16a   :  { %v477_v6 = vadd.f32 %v476_v22, %v362_v19 }
 0x16b   :  { %v458_v23 = vpop.f32.mrf.mxu1 }
 0x16c   :  { %v459_v40 = vadd.f32 %v458_v23, %v327_v11 }
 0x16e   :  { %v497_v45 = vmax.f32 %v459_v40, 0.0  ;;  %v586_v40 = vpop.permute.xlu1 %585 }
 0x170   :  { %v609_v53 = vmul.f32 %v536_v35, %v497_v45 }
 0x171   :  { %v478_v26 = vpop.f32.mrf.mxu2 }
 0x172   :  { %v624_v61 = vadd.f32 %v609_v53, %v608_v57  ;;  %v479_v11 = vadd.f32 %v478_v26, %v367_v20 }
 0x173   :  { %v461_v28 = vpop.f32.mrf.mxu1 }
 0x174   :  { %v462_v43 = vadd.f32 %v461_v28, %v332_v12  ;;  %v505_v28 = vmax.f32 %v479_v11, 0.0 }
 0x176   :  { %v498_v50 = vmax.f32 %v462_v43, 0.0 }
 0x178   :  { %v610_v58 = vmul.f32 %v541_v37, %v498_v50 }
 0x179   :  { %v481_v30 = vpop.f32.mrf.mxu2 }
 0x17a   :  { %v625_v1 = vadd.f32 %v624_v61, %v610_v58 }
 0x17b   :  { %v463_v32 = vpop.f32.mrf.mxu1 }
 0x17c   :  { %v464_v46 = vadd.f32 %v463_v32, %v337_v13 }
 0x17e   :  { %v499_v54 = vmax.f32 %v464_v46, 0.0 }
 0x180   :  { %v611_v62 = vmul.f32 %v546_v38, %v499_v54 }
 0x181   :  { %v483_v34 = vpop.f32.mrf.mxu2 }
 0x182   :  { %v626_v7 = vadd.f32 %v625_v1, %v611_v62  ;;  %v484_v32 = vadd.f32 %v483_v34, %v377_v24 }
 0x183   :  { %v466_v36 = vpop.f32.mrf.mxu1 }
 0x184   :  { %v467_v51 = vadd.f32 %v466_v36, %v342_v14  ;;  %v581_v36 = vpop.permute.xlu0 %580  ;;  %v507_v20 = vmax.f32 %v484_v32, 0.0 }
 0x186   :  { %v500_v59 = vmax.f32 %v467_v51, 0.0 }
 0x188   :  { %v612_v2 = vmul.f32 %v551_v44, %v500_v59  ;;  %v619_v44 = vmul.f32 %v586_v40, %v507_v20 }
 0x189   :  { %v486_v39 = vpop.f32.mrf.mxu2 }
 0x18a   :  { %v627_v12 = vadd.f32 %v626_v7, %v612_v2  ;;  %v487_v19 = vadd.f32 %v486_v39, %v1047_v25 }
 0x18b   :  { %v468_v41 = vpop.f32.mrf.mxu1 }
 0x18c   :  { %v469_v55 = vadd.f32 %v468_v41, %v347_v15  ;;  %v504_v15 = vmax.f32 %v477_v6, 0.0  ;;  %v617_v41 = vmul.f32 %v576_v5, %v505_v28  ;;  %v508_v43 = vmax.f32 %v487_v19, 0.0  ;;  %v596_v49 = vpop.permute.xlu0 %595 }
 0x18e   :  { %v501_v63 = vmax.f32 %v469_v55, 0.0  ;;  %v616_v37 = vmul.f32 %v571_v4, %v504_v15  ;;  %v620_v25 = vmul.f32 %v591_v42, %v508_v43  ;;  %v606_v55 = vpop.permute.xlu2 %605 }
 0x190   :  { %v613_v8 = vmul.f32 %v556_v47, %v501_v63 }
 0x191   :  { %v488_v52 = vpop.f32.mrf.mxu2 }
 0x192   :  { %v628_v18 = vadd.f32 %v627_v12, %v613_v8  ;;  %v489_v26 = vadd.f32 %v488_v52, %v1049_v27  ;;  %v601_v52 = vpop.permute.xlu1 %600 }
 0x193   :  { %v471_v56 = vpop.f32.mrf.mxu1 }
 0x194   :  { %v472_v60 = vadd.f32 %v471_v56, %v352_v16  ;;  %v482_v16 = vadd.f32 %v481_v30, %v372_v21  ;;  %v509_v45 = vmax.f32 %v489_v26, 0.0 }
 0x196   :  { %v502_v3 = vmax.f32 %v472_v60, 0.0  ;;  %v506_v38 = vmax.f32 %v482_v16, 0.0  ;;  %v621_v50 = vmul.f32 %v596_v49, %v509_v45 }
 0x198   :  { %v614_v13 = vmul.f32 %v561_v48, %v502_v3  ;;  %v618_v30 = vmul.f32 %v581_v36, %v506_v38 }
 0x199   :  { %v491_v9 = vpop.f32.mrf.mxu2 }
 0x19a   :  { %v629_v33 = vadd.f32 %v628_v18, %v614_v13  ;;  %v492_v24 = vadd.f32 %v491_v9, %v1051_v29 }
 0x19b   :  { %v473_v10 = vpop.f32.mrf.mxu1 }
 0x19c   :  { %v474_v14 = vadd.f32 %v473_v10, %v357_v17  ;;  %v510_v39 = vmax.f32 %v492_v24, 0.0 }
 0x19e   :  { %v503_v23 = vmax.f32 %v474_v14, 0.0  ;;  %v622_v53 = vmul.f32 %v601_v52, %v510_v39 }
 0x1a0   :  { %v615_v35 = vmul.f32 %v566_v0, %v503_v23 }
 0x1a1   :  { %v493_v21 = vpop.f32.mrf.mxu2 }
 0x1a2   :  { %v630_v22 = vadd.f32 %v629_v33, %v615_v35  ;;  %v494_v47 = vadd.f32 %v493_v21, %v1053_v31  ;;  %v646_v31 = vstv %s1071_s6 }
 0x1a4   :  { %v631_v17 = vadd.f32 %v630_v22, %v616_v37  ;;  %v511_v51 = vmax.f32 %v494_v47, 0.0 }
 0x1a6   :  { %v632_v34 = vadd.f32 %v631_v17, %v617_v41  ;;  %v623_v56 = vmul.f32 %v606_v55, %v511_v51 }
 0x1a8   :  { %v633_v46 = vadd.f32 %v632_v34, %v618_v30 }
 0x1aa   :  { %v634_v48 = vadd.f32 %v633_v46, %v619_v44 }
 0x1ac   :  { %v635_v27 = vadd.f32 %v634_v48, %v620_v25 }
 0x1ae   :  { %v636_v54 = vadd.f32 %v635_v27, %v621_v50 }
 0x1b0   :  { %v637_v57 = vadd.f32 %v636_v54, %v622_v53 }
 0x1b2   :  { %v638_v29 = vadd.f32 %v637_v57, %v623_v56 }
 0x1b4   :  { %v639_v58 = vrot.slane %v638_v29, 4 }
 0x1b6   :  { %v640_v59 = vadd.f32 %v639_v58, %v638_v29 }
 0x1b8   :  { %v641_v60 = vrot.slane %v640_v59, 2 }
 0x1ba   :  { %v642_v61 = vadd.f32 %v641_v60, %v640_v59 }
 0x1bc   :  { %v643_v62 = vrot.slane %v642_v61, 1 }
 0x1be   :  { %v644_v63 = vadd.f32 %v643_v62, %v642_v61 }
 0x1c0   :  { %v647_v0 = vadd.f32 %v646_v31, %v644_v63 }
 0x1c2   :  { %648 = vst [vmem:[#allocation3] sm:$0x1] %v647_v0 }
 0x1c3   :  { %659 = dma.vmem_to_hbm [thread:$0]  %s655_s28, 16, %s657_s1, [#allocation4]  }
 0x1c4   :  { %796 = dma.done.wait [#allocation4], 16  }
 0x1c5   :  { %797 = vsyncadd [#allocation4], 4294967280 }
 0x1c6   :  { %664 = vsyncpa [#allocation4], 1 }

</bundles_post_ra>
